<compile_context>
chip_gen: v6e
topology: v6e:2x2x1
jax: 0.10.0
libtpu: 0.0.40
codegen_flags: <defaults>
</compile_context>

<pallas_src>
import functools

import jax
import jax.numpy as jnp
from jax import lax
from jax.experimental import pallas as pl
from jax.experimental.pallas import tpu as pltpu

BN_EPS = 1e-3


def _round_up(x, m):
    return (x + m - 1) // m * m


# ----------------------------------------------------------------------------
# Pallas kernels
# ----------------------------------------------------------------------------
def _conv_stats_kernel(x_ref, w_ref, m_ref, y_ref, s_ref, ss_ref, *, offs, mo):
    """Pass 1 (per image): conv as unrolled shifted-flat-view matmuls + BN stats.

    x_ref : (1, Mf, Cin)  bf16 flattened (shifted / phase-flat) input rows
    w_ref : (T, Cin, Cp)  bf16 weights (constant index_map -> VMEM-resident)
    m_ref : (1, Mo, 1)    f32 valid-column mask (0 on flat-layout garbage cols)
    y_ref : (1, Mo, Cp)   bf16 raw conv output
    s_ref : (1, 1, Cp)    f32 per-image masked channel sums
    ss_ref: (1, 1, Cp)    f32 per-image masked channel sum-of-squares
    """
    acc = jnp.dot(x_ref[0, offs[0]:offs[0] + mo, :], w_ref[0],
                  preferred_element_type=jnp.float32)
    for t in range(1, len(offs)):
        off = offs[t]
        acc += jnp.dot(x_ref[0, off:off + mo, :], w_ref[t],
                       preferred_element_type=jnp.float32)
    y_ref[0] = acc.astype(y_ref.dtype)
    am = acc * m_ref[0]
    s_ref[0] = jnp.sum(am, axis=0, keepdims=True)
    ss_ref[0] = jnp.sum(am * acc, axis=0, keepdims=True)


def _bn_relu_kernel(y_ref, sc_ref, sh_ref, o_ref, *, wo, cout):
    """Pass 2 (per image): y*scale + shift, ReLU; drops garbage cols / pad chans."""
    y = y_ref[0, :, :wo, :].astype(jnp.float32)      # (Ho, Wo, Cp)
    r = jnp.maximum(y * sc_ref[0] + sh_ref[0], 0.0)
    o_ref[0] = r[..., :cout].astype(o_ref.dtype)


def _maxpool_kernel(x_ref, o_ref, *, offs, mo):
    """3x3 / stride-2 max-pool as elementwise max over 9 phase-flat tap slices."""
    r = x_ref[0, offs[0]:offs[0] + mo, :]
    for off in offs[1:]:
        r = jnp.maximum(r, x_ref[0, off:off + mo, :])
    o_ref[0] = r


# ----------------------------------------------------------------------------
# Flat-view construction (wrapper glue; one bf16 pad/copy per conv at most)
# ----------------------------------------------------------------------------
def _shift_flatten_s1(xb, padding):
    """3x3 stride-1 conv: flatten padded image rows; taps are contiguous slices.

    Returns xf (N, Mf, C), tap offsets (9,), Ho, Wo, Wrow (= padded width).
    Output is computed at full padded width; columns >= Wo per row are garbage
    (masked from BN stats, dropped in pass 2).  One extra zero row keeps the
    last tap slice in bounds.
    """
    n, h, w, c = xb.shape
    hp, wp = h + 2 * padding, w + 2 * padding
    ho, wo = hp - 2, wp - 2
    xp = jnp.pad(xb, ((0, 0), (padding, padding + 1), (padding, padding), (0, 0)))
    xf = xp.reshape(n, (hp + 1) * wp, c)
    offs = tuple(di * wp + dj for di in range(3) for dj in range(3))
    return xf, offs, ho, wo, wp


def _phase_flatten_s2(xb):
    """3x3 stride-2 conv / pool: 2x2 phase decomposition, flattened + concat.

    Tap (di, dj) lives in phase (di%2, dj%2) at offset (di//2, dj//2), so every
    tap is again a contiguous slice of the flat rows.  All phases are padded to
    a common (Hph, Wph) so one column mask / output layout works for all taps.
    """
    n, h, w, c = xb.shape
    ho = (h - 3) // 2 + 1
    wo = (w - 3) // 2 + 1
    hph = (h + 1) // 2
    wph = (w + 1) // 2
    phases = []
    for p in (0, 1):
        for q in (0, 1):
            ph = xb[:, p::2, q::2, :]
            ph = jnp.pad(ph, ((0, 0), (0, hph - ph.shape[1]),
                              (0, wph - ph.shape[2]), (0, 0)))
            phases.append(ph.reshape(n, hph * wph, c))
    xf = jnp.concatenate(phases, axis=1)            # (N, 4*Hph*Wph, C)
    base = hph * wph
    offs = tuple((2 * (di % 2) + (dj % 2)) * base + (di // 2) * wph + (dj // 2)
                 for di in range(3) for dj in range(3))
    return xf, offs, ho, wo, wph


# ----------------------------------------------------------------------------
# BasicConv2d = conv -> train-mode BN -> ReLU
# ----------------------------------------------------------------------------
def _conv_bn_relu_flat(xf, offs, ho, wo, wrow, w_hwio, gamma, beta,
                       *, out_dtype=jnp.bfloat16):
    n, mf, cin = xf.shape
    kh, kw, _, cout = w_hwio.shape
    ktaps = kh * kw
    assert len(offs) == ktaps
    cp = _round_up(cout, 128)                       # lane-dense output channels
    mo = ho * wrow

    # Weights: cast to bf16 first, then pad Cout -> Cp (tiny copy).
    w_mat = jnp.pad(w_hwio.astype(jnp.bfloat16).reshape(ktaps, cin, cout),
                    ((0, 0), (0, 0), (0, cp - cout)))

    # Valid-column mask: flat row p is valid iff (p % wrow) < wo.
    mask = jnp.broadcast_to(
        (jnp.arange(wrow) < wo).astype(jnp.float32)[None, :],
        (ho, wrow)).reshape(1, mo, 1)

    # Right-size the VMEM limit from the actual per-step footprint (keeps
    # headroom on v7x's 64 MiB physical VMEM).
    bytes_stream = mf * cin * 2 + mo * 4 + mo * cp * 2 + 2 * cp * 4
    bytes_fixed = ktaps * cin * cp * 2 + mo * cp * 4
    need = 2 * bytes_stream + bytes_fixed
    vmem_limit = int(min(max(2 * need, 16 * 2**20), 48 * 2**20))

    cost = pl.CostEstimate(
        flops=2 * n * mo * ktaps * cin * cp, transcendentals=0,
        bytes_accessed=2 * (n * mf * cin + ktaps * cin * cp + n * mo * cp))

    y, sums, sumsqs = pl.pallas_call(
        functools.partial(_conv_stats_kernel, offs=tuple(offs), mo=mo),
        grid=(n,),
        in_specs=[pl.BlockSpec((1, mf, cin), lambda i: (i, 0, 0)),
                  pl.BlockSpec((ktaps, cin, cp), lambda i: (0, 0, 0)),
                  pl.BlockSpec((1, mo, 1), lambda i: (0, 0, 0))],
        out_specs=[pl.BlockSpec((1, mo, cp), lambda i: (i, 0, 0)),
                   pl.BlockSpec((1, 1, cp), lambda i: (i, 0, 0)),
                   pl.BlockSpec((1, 1, cp), lambda i: (i, 0, 0))],
        out_shape=(jax.ShapeDtypeStruct((n, mo, cp), jnp.bfloat16),
                   jax.ShapeDtypeStruct((n, 1, cp), jnp.float32),
                   jax.ShapeDtypeStruct((n, 1, cp), jnp.float32)),
        compiler_params=pltpu.CompilerParams(
            dimension_semantics=("parallel",),
            vmem_limit_bytes=vmem_limit),
        cost_estimate=cost,
    )(xf, w_mat, mask)

    # Finalize training-mode BN statistics (tiny, Cout-sized math).
    # TODO(synk): switch to a shifted/Welford accumulation if E[x^2]-E[x]^2
    # cancellation ever becomes an issue.
    cnt = n * ho * wo
    s = jnp.sum(sums, axis=(0, 1))
    ss = jnp.sum(sumsqs, axis=(0, 1))
    mean = s / cnt
    var = jnp.maximum(ss / cnt - mean * mean, 0.0)
    gpad = jnp.pad(gamma.astype(jnp.float32), (0, cp - cout))
    bpad = jnp.pad(beta.astype(jnp.float32), (0, cp - cout))
    inv = lax.rsqrt(var + BN_EPS)
    scale = (gpad * inv).reshape(1, 1, cp)
    shift = (bpad - mean * gpad * inv).reshape(1, 1, cp)

    y4 = y.reshape(n, ho, wrow, cp)                 # free (metadata) reshape
    return pl.pallas_call(
        functools.partial(_bn_relu_kernel, wo=wo, cout=cout),
        grid=(n,),
        in_specs=[pl.BlockSpec((1, ho, wrow, cp), lambda i: (i, 0, 0, 0)),
                  pl.BlockSpec((1, 1, cp), lambda i: (0, 0, 0)),
                  pl.BlockSpec((1, 1, cp), lambda i: (0, 0, 0))],
        out_specs=pl.BlockSpec((1, ho, wo, cout), lambda i: (i, 0, 0, 0)),
        out_shape=jax.ShapeDtypeStruct((n, ho, wo, cout), out_dtype),
        compiler_params=pltpu.CompilerParams(
            dimension_semantics=("parallel",)),
    )(y4, scale, shift)


def conv_bn_relu(x, w_hwio, gamma, beta, *, stride, padding,
                 out_dtype=jnp.bfloat16):
    """BasicConv2d: x (N,H,W,Cin) -> (N,Ho,Wo,Cout)."""
    kh, kw, _, _ = w_hwio.shape
    xb = x.astype(jnp.bfloat16)
    if kh == 1 and kw == 1:
        n, h, w, c = xb.shape
        xf = xb.reshape(n, h * w, c)                # no copy at all for 1x1
        offs, ho, wo, wrow = (0,), h, w, w
    elif stride == 1:
        xf, offs, ho, wo, wrow = _shift_flatten_s1(xb, padding)
    else:
        assert stride == 2 and padding == 0
        xf, offs, ho, wo, wrow = _phase_flatten_s2(xb)
    return _conv_bn_relu_flat(xf, offs, ho, wo, wrow, w_hwio, gamma, beta,
                              out_dtype=out_dtype)


def _maxpool_flat(xf, offs, ho, wo, wrow):
    """3x3 / stride-2 max-pool from a shared phase-flat view of x."""
    n, mf, c = xf.shape
    mo = ho * wrow
    r = pl.pallas_call(
        functools.partial(_maxpool_kernel, offs=tuple(offs), mo=mo),
        grid=(n,),
        in_specs=[pl.BlockSpec((1, mf, c), lambda i: (i, 0, 0))],
        out_specs=pl.BlockSpec((1, mo, c), lambda i: (i, 0, 0)),
        out_shape=jax.ShapeDtypeStruct((n, mo, c), xf.dtype),
        compiler_params=pltpu.CompilerParams(
            dimension_semantics=("parallel",)),
    )(xf)
    return r.reshape(n, ho, wrow, c)[:, :, :wo, :]


# ----------------------------------------------------------------------------
# ReductionA
# ----------------------------------------------------------------------------
def init_reduction_a_params(key, in_channels, k, l, m, n):
    def conv_w(key, kh, kw, cin, cout):
        return 0.1 * jax.random.normal(key, (kh, kw, cin, cout), jnp.float32)

    def bn(key, c):
        k1, k2 = jax.random.split(key)
        gamma = 1.0 + 0.1 * jax.random.normal(k1, (c,), jnp.float32)
        beta = 0.1 * jax.random.normal(k2, (c,), jnp.float32)
        return gamma, beta

    keys = jax.random.split(key, 8)
    return {
        "b0_w": conv_w(keys[0], 3, 3, in_channels, n), "b0_bn": bn(keys[1], n),
        "b1a_w": conv_w(keys[2], 1, 1, in_channels, k), "b1a_bn": bn(keys[3], k),
        "b1b_w": conv_w(keys[4], 3, 3, k, l), "b1b_bn": bn(keys[5], l),
        "b1c_w": conv_w(keys[6], 3, 3, l, m), "b1c_bn": bn(keys[7], m),
    }


def reduction_a(params, x):
    """x: (N, H, W, Cin) -> (N, Ho, Wo, n + m + Cin)."""
    xb = x.astype(jnp.bfloat16)
    # One shared phase-flat copy of x feeds both branch_0's stride-2 conv and
    # the max-pool branch (no per-branch phase materialization).
    xf2, offs2, ho2, wo2, wrow2 = _phase_flatten_s2(xb)

    b0 = _conv_bn_relu_flat(xf2, offs2, ho2, wo2, wrow2,
                            params["b0_w"], *params["b0_bn"],
                            out_dtype=jnp.float32)

    b1 = conv_bn_relu(x, params["b1a_w"], *params["b1a_bn"],
                      stride=1, padding=0)
    b1 = conv_bn_relu(b1, params["b1b_w"], *params["b1b_bn"],
                      stride=1, padding=1)
    b1 = conv_bn_relu(b1, params["b1c_w"], *params["b1c_bn"],
                      stride=2, padding=0, out_dtype=jnp.float32)

    b2 = _maxpool_flat(xf2, offs2, ho2, wo2, wrow2).astype(jnp.float32)
    # torch.cat([...], dim=1) on NCHW == concat on channel (last) axis in NHWC.
    return jnp.concatenate([b0, b1, b2], axis=-1)


# ----------------------------------------------------------------------------
# Pure-JAX f32 reference (for sanity check)
# ----------------------------------------------------------------------------
def _ref_conv_bn_relu(x, w_hwio, gamma, beta, stride, padding):
    y = lax.conv_general_dilated(
        x, w_hwio, (stride, stride),
        padding=[(padding, padding), (padding, padding)],
        dimension_numbers=("NHWC", "HWIO", "NHWC"))
    mean = jnp.mean(y, axis=(0, 1, 2), keepdims=True)
    var = jnp.mean(jnp.square(y - mean), axis=(0, 1, 2), keepdims=True)
    yn = (y - mean) / jnp.sqrt(var + BN_EPS) * gamma.reshape(1, 1, 1, -1) \
        + beta.reshape(1, 1, 1, -1)
    return jnp.maximum(yn, 0.0)


def _ref_reduction_a(params, x):
    b0 = _ref_conv_bn_relu(x, params["b0_w"], *params["b0_bn"], 2, 0)
    b1 = _ref_conv_bn_relu(x, params["b1a_w"], *params["b1a_bn"], 1, 0)
    b1 = _ref_conv_bn_relu(b1, params["b1b_w"], *params["b1b_bn"], 1, 1)
    b1 = _ref_conv_bn_relu(b1, params["b1c_w"], *params["b1c_bn"], 2, 0)
    b2 = lax.reduce_window(x, -jnp.inf, lax.max,
                           (1, 3, 3, 1), (1, 2, 2, 1), "VALID")
    return jnp.concatenate([b0, b1, b2], axis=-1)


# ----------------------------------------------------------------------------
if __name__ == "__main__":
    key = jax.random.PRNGKey(0)
    k_x, k_p = jax.random.split(key)

    batch, in_channels, hw = 2, 4, 16
    k_ch, l_ch, m_ch, n_ch = 4, 5, 6, 7

    # input in kernel layout NHWC (PyTorch equivalent is (2, 4, 16, 16) NCHW)
    x = jax.random.normal(k_x, (batch, hw, hw, in_channels), jnp.float32)
    params = init_reduction_a_params(k_p, in_channels, k_ch, l_ch, m_ch, n_ch)

    out = jax.block_until_ready(reduction_a(params, x))
    ref = jax.block_until_ready(_ref_reduction_a(params, x))

    assert out.shape == (batch, 7, 7, n_ch + m_ch + in_channels), out.shape
    # bf16 MXU inputs / bf16 inter-layer activations vs f32 reference.
    err = float(jnp.max(jnp.abs(out - ref)))
    assert err < 0.25, err

    print("KERNEL_OK")
</pallas_src>

<mosaic_0001>
module attributes {stable_mosaic.version = 11 : i64} {
  func.func @_conv_stats_kernel(%arg0: i32, %arg1: memref<1x256x4xbf16, #tpu.memory_space<vmem>>, %arg2: memref<9x4x128xbf16, #tpu.memory_space<vmem>>, %arg3: memref<1x56x1xf32, #tpu.memory_space<vmem>>, %arg4: memref<1x56x128xbf16, #tpu.memory_space<vmem>>, %arg5: memref<1x1x128xf32, #tpu.memory_space<vmem>>, %arg6: memref<1x1x128xf32, #tpu.memory_space<vmem>>) attributes {dimension_semantics = [#tpu.dimension_semantics<parallel>], iteration_bounds = array<i64: 2>, scalar_prefetch = 0 : i64, scratch_operands = 0 : i64, tpu.core_type = #tpu.core_type<tc>, window_params = [{transform_indices = @transform_0, window_bounds = array<i64: 1, 256, 4>}, {pipeline_mode = #tpu.pipeline_mode<synchronous>, transform_indices = @transform_1, window_bounds = array<i64: 9, 4, 128>}, {pipeline_mode = #tpu.pipeline_mode<synchronous>, transform_indices = @transform_2, window_bounds = array<i64: 1, 56, 1>}, {transform_indices = @transform_3, window_bounds = array<i64: 1, 56, 128>}, {transform_indices = @transform_4, window_bounds = array<i64: 1, 1, 128>}, {transform_indices = @transform_5, window_bounds = array<i64: 1, 1, 128>}]} {
    %c0 = arith.constant 0 : index
    %c0_0 = arith.constant 0 : index
    %c0_1 = arith.constant 0 : index
    %0 = vector.load %arg1[%c0, %c0_0, %c0_1] : memref<1x256x4xbf16, #tpu.memory_space<vmem>>, vector<1x56x4xbf16>
    %1 = vector.shape_cast %0 : vector<1x56x4xbf16> to vector<56x4xbf16>
    %c0_2 = arith.constant 0 : index
    %c0_3 = arith.constant 0 : index
    %c0_4 = arith.constant 0 : index
    %2 = vector.load %arg2[%c0_2, %c0_3, %c0_4] : memref<9x4x128xbf16, #tpu.memory_space<vmem>>, vector<1x4x128xbf16>
    %3 = vector.shape_cast %2 : vector<1x4x128xbf16> to vector<4x128xbf16>
    %cst = arith.constant dense<0.000000e+00> : vector<56x128xf32>
    %4 = tpu.matmul %1, %3, %cst {dimension_numbers = #tpu.dot_dimension_numbers<[1], [0], [0], [1], [0, 0, 1, 1], [], []>} : vector<56x4xbf16>, vector<4x128xbf16>, vector<56x128xf32> -> vector<56x128xf32>
    %c0_5 = arith.constant 0 : index
    %c64 = arith.constant 64 : index
    %c0_6 = arith.constant 0 : index
    %5 = vector.load %arg1[%c0_5, %c64, %c0_6] : memref<1x256x4xbf16, #tpu.memory_space<vmem>>, vector<1x56x4xbf16>
    %6 = vector.shape_cast %5 : vector<1x56x4xbf16> to vector<56x4xbf16>
    %c1 = arith.constant 1 : index
    %c0_7 = arith.constant 0 : index
    %c0_8 = arith.constant 0 : index
    %7 = vector.load %arg2[%c1, %c0_7, %c0_8] : memref<9x4x128xbf16, #tpu.memory_space<vmem>>, vector<1x4x128xbf16>
    %8 = vector.shape_cast %7 : vector<1x4x128xbf16> to vector<4x128xbf16>
    %cst_9 = arith.constant dense<0.000000e+00> : vector<56x128xf32>
    %9 = tpu.matmul %6, %8, %cst_9 {dimension_numbers = #tpu.dot_dimension_numbers<[1], [0], [0], [1], [0, 0, 1, 1], [], []>} : vector<56x4xbf16>, vector<4x128xbf16>, vector<56x128xf32> -> vector<56x128xf32>
    %10 = arith.addf %4, %9 : vector<56x128xf32>
    %c0_10 = arith.constant 0 : index
    %c1_11 = arith.constant 1 : index
    %c0_12 = arith.constant 0 : index
    %11 = vector.load %arg1[%c0_10, %c1_11, %c0_12] : memref<1x256x4xbf16, #tpu.memory_space<vmem>>, vector<1x56x4xbf16>
    %12 = vector.shape_cast %11 : vector<1x56x4xbf16> to vector<56x4xbf16>
    %c2 = arith.constant 2 : index
    %c0_13 = arith.constant 0 : index
    %c0_14 = arith.constant 0 : index
    %13 = vector.load %arg2[%c2, %c0_13, %c0_14] : memref<9x4x128xbf16, #tpu.memory_space<vmem>>, vector<1x4x128xbf16>
    %14 = vector.shape_cast %13 : vector<1x4x128xbf16> to vector<4x128xbf16>
    %cst_15 = arith.constant dense<0.000000e+00> : vector<56x128xf32>
    %15 = tpu.matmul %12, %14, %cst_15 {dimension_numbers = #tpu.dot_dimension_numbers<[1], [0], [0], [1], [0, 0, 1, 1], [], []>} : vector<56x4xbf16>, vector<4x128xbf16>, vector<56x128xf32> -> vector<56x128xf32>
    %16 = arith.addf %10, %15 : vector<56x128xf32>
    %c0_16 = arith.constant 0 : index
    %c128 = arith.constant 128 : index
    %c0_17 = arith.constant 0 : index
    %17 = vector.load %arg1[%c0_16, %c128, %c0_17] : memref<1x256x4xbf16, #tpu.memory_space<vmem>>, vector<1x56x4xbf16>
    %18 = vector.shape_cast %17 : vector<1x56x4xbf16> to vector<56x4xbf16>
    %c3 = arith.constant 3 : index
    %c0_18 = arith.constant 0 : index
    %c0_19 = arith.constant 0 : index
    %19 = vector.load %arg2[%c3, %c0_18, %c0_19] : memref<9x4x128xbf16, #tpu.memory_space<vmem>>, vector<1x4x128xbf16>
    %20 = vector.shape_cast %19 : vector<1x4x128xbf16> to vector<4x128xbf16>
    %cst_20 = arith.constant dense<0.000000e+00> : vector<56x128xf32>
    %21 = tpu.matmul %18, %20, %cst_20 {dimension_numbers = #tpu.dot_dimension_numbers<[1], [0], [0], [1], [0, 0, 1, 1], [], []>} : vector<56x4xbf16>, vector<4x128xbf16>, vector<56x128xf32> -> vector<56x128xf32>
    %22 = arith.addf %16, %21 : vector<56x128xf32>
    %c0_21 = arith.constant 0 : index
    %c192 = arith.constant 192 : index
    %c0_22 = arith.constant 0 : index
    %23 = vector.load %arg1[%c0_21, %c192, %c0_22] : memref<1x256x4xbf16, #tpu.memory_space<vmem>>, vector<1x56x4xbf16>
    %24 = vector.shape_cast %23 : vector<1x56x4xbf16> to vector<56x4xbf16>
    %c4 = arith.constant 4 : index
    %c0_23 = arith.constant 0 : index
    %c0_24 = arith.constant 0 : index
    %25 = vector.load %arg2[%c4, %c0_23, %c0_24] : memref<9x4x128xbf16, #tpu.memory_space<vmem>>, vector<1x4x128xbf16>
    %26 = vector.shape_cast %25 : vector<1x4x128xbf16> to vector<4x128xbf16>
    %cst_25 = arith.constant dense<0.000000e+00> : vector<56x128xf32>
    %27 = tpu.matmul %24, %26, %cst_25 {dimension_numbers = #tpu.dot_dimension_numbers<[1], [0], [0], [1], [0, 0, 1, 1], [], []>} : vector<56x4xbf16>, vector<4x128xbf16>, vector<56x128xf32> -> vector<56x128xf32>
    %28 = arith.addf %22, %27 : vector<56x128xf32>
    %c0_26 = arith.constant 0 : index
    %c129 = arith.constant 129 : index
    %c0_27 = arith.constant 0 : index
    %29 = vector.load %arg1[%c0_26, %c129, %c0_27] : memref<1x256x4xbf16, #tpu.memory_space<vmem>>, vector<1x56x4xbf16>
    %30 = vector.shape_cast %29 : vector<1x56x4xbf16> to vector<56x4xbf16>
    %c5 = arith.constant 5 : index
    %c0_28 = arith.constant 0 : index
    %c0_29 = arith.constant 0 : index
    %31 = vector.load %arg2[%c5, %c0_28, %c0_29] : memref<9x4x128xbf16, #tpu.memory_space<vmem>>, vector<1x4x128xbf16>
    %32 = vector.shape_cast %31 : vector<1x4x128xbf16> to vector<4x128xbf16>
    %cst_30 = arith.constant dense<0.000000e+00> : vector<56x128xf32>
    %33 = tpu.matmul %30, %32, %cst_30 {dimension_numbers = #tpu.dot_dimension_numbers<[1], [0], [0], [1], [0, 0, 1, 1], [], []>} : vector<56x4xbf16>, vector<4x128xbf16>, vector<56x128xf32> -> vector<56x128xf32>
    %34 = arith.addf %28, %33 : vector<56x128xf32>
    %c0_31 = arith.constant 0 : index
    %c8 = arith.constant 8 : index
    %c0_32 = arith.constant 0 : index
    %35 = vector.load %arg1[%c0_31, %c8, %c0_32] : memref<1x256x4xbf16, #tpu.memory_space<vmem>>, vector<1x56x4xbf16>
    %36 = vector.shape_cast %35 : vector<1x56x4xbf16> to vector<56x4xbf16>
    %c6 = arith.constant 6 : index
    %c0_33 = arith.constant 0 : index
    %c0_34 = arith.constant 0 : index
    %37 = vector.load %arg2[%c6, %c0_33, %c0_34] : memref<9x4x128xbf16, #tpu.memory_space<vmem>>, vector<1x4x128xbf16>
    %38 = vector.shape_cast %37 : vector<1x4x128xbf16> to vector<4x128xbf16>
    %cst_35 = arith.constant dense<0.000000e+00> : vector<56x128xf32>
    %39 = tpu.matmul %36, %38, %cst_35 {dimension_numbers = #tpu.dot_dimension_numbers<[1], [0], [0], [1], [0, 0, 1, 1], [], []>} : vector<56x4xbf16>, vector<4x128xbf16>, vector<56x128xf32> -> vector<56x128xf32>
    %40 = arith.addf %34, %39 : vector<56x128xf32>
    %c0_36 = arith.constant 0 : index
    %c72 = arith.constant 72 : index
    %c0_37 = arith.constant 0 : index
    %41 = vector.load %arg1[%c0_36, %c72, %c0_37] : memref<1x256x4xbf16, #tpu.memory_space<vmem>>, vector<1x56x4xbf16>
    %42 = vector.shape_cast %41 : vector<1x56x4xbf16> to vector<56x4xbf16>
    %c7 = arith.constant 7 : index
    %c0_38 = arith.constant 0 : index
    %c0_39 = arith.constant 0 : index
    %43 = vector.load %arg2[%c7, %c0_38, %c0_39] : memref<9x4x128xbf16, #tpu.memory_space<vmem>>, vector<1x4x128xbf16>
    %44 = vector.shape_cast %43 : vector<1x4x128xbf16> to vector<4x128xbf16>
    %cst_40 = arith.constant dense<0.000000e+00> : vector<56x128xf32>
    %45 = tpu.matmul %42, %44, %cst_40 {dimension_numbers = #tpu.dot_dimension_numbers<[1], [0], [0], [1], [0, 0, 1, 1], [], []>} : vector<56x4xbf16>, vector<4x128xbf16>, vector<56x128xf32> -> vector<56x128xf32>
    %46 = arith.addf %40, %45 : vector<56x128xf32>
    %c0_41 = arith.constant 0 : index
    %c9 = arith.constant 9 : index
    %c0_42 = arith.constant 0 : index
    %47 = vector.load %arg1[%c0_41, %c9, %c0_42] : memref<1x256x4xbf16, #tpu.memory_space<vmem>>, vector<1x56x4xbf16>
    %48 = vector.shape_cast %47 : vector<1x56x4xbf16> to vector<56x4xbf16>
    %c8_43 = arith.constant 8 : index
    %c0_44 = arith.constant 0 : index
    %c0_45 = arith.constant 0 : index
    %49 = vector.load %arg2[%c8_43, %c0_44, %c0_45] : memref<9x4x128xbf16, #tpu.memory_space<vmem>>, vector<1x4x128xbf16>
    %50 = vector.shape_cast %49 : vector<1x4x128xbf16> to vector<4x128xbf16>
    %cst_46 = arith.constant dense<0.000000e+00> : vector<56x128xf32>
    %51 = tpu.matmul %48, %50, %cst_46 {dimension_numbers = #tpu.dot_dimension_numbers<[1], [0], [0], [1], [0, 0, 1, 1], [], []>} : vector<56x4xbf16>, vector<4x128xbf16>, vector<56x128xf32> -> vector<56x128xf32>
    %52 = arith.addf %46, %51 : vector<56x128xf32>
    %53 = arith.truncf %52 : vector<56x128xf32> to vector<56x128xbf16>
    %c0_47 = arith.constant 0 : index
    %c0_48 = arith.constant 0 : index
    %c0_49 = arith.constant 0 : index
    %54 = vector.load %arg4[%c0_47, %c0_48, %c0_49] : memref<1x56x128xbf16, #tpu.memory_space<vmem>>, vector<1x56x128xbf16>
    %55 = vector.shape_cast %54 : vector<1x56x128xbf16> to vector<56x128xbf16>
    %56 = vector.shape_cast %53 : vector<56x128xbf16> to vector<1x56x128xbf16>
    tpu.vector_store %arg4[%c0_47, %c0_48, %c0_49], %56 {strides = array<i32>} : memref<1x56x128xbf16, #tpu.memory_space<vmem>>, vector<1x56x128xbf16>,
    %c0_50 = arith.constant 0 : index
    %c0_51 = arith.constant 0 : index
    %c0_52 = arith.constant 0 : index
    %57 = vector.load %arg3[%c0_50, %c0_51, %c0_52] : memref<1x56x1xf32, #tpu.memory_space<vmem>>, vector<1x56x1xf32>
    %58 = vector.shape_cast %57 : vector<1x56x1xf32> to vector<56x1xf32>
    %59 = vector.broadcast %58 : vector<56x1xf32> to vector<56x128xf32>
    %60 = arith.mulf %52, %59 : vector<56x128xf32>
    %cst_53 = arith.constant dense<0.000000e+00> : vector<128xf32>
    %61 = vector.multi_reduction <add>, %60, %cst_53 [0] : vector<56x128xf32> to vector<128xf32>
    %62 = vector.shape_cast %61 : vector<128xf32> to vector<1x128xf32>
    %c0_54 = arith.constant 0 : index
    %c0_55 = arith.constant 0 : index
    %c0_56 = arith.constant 0 : index
    %63 = vector.load %arg5[%c0_54, %c0_55, %c0_56] : memref<1x1x128xf32, #tpu.memory_space<vmem>>, vector<1x1x128xf32>
    %64 = vector.shape_cast %63 : vector<1x1x128xf32> to vector<1x128xf32>
    %65 = vector.shape_cast %62 : vector<1x128xf32> to vector<1x1x128xf32>
    tpu.vector_store %arg5[%c0_54, %c0_55, %c0_56], %65 {strides = array<i32>} : memref<1x1x128xf32, #tpu.memory_space<vmem>>, vector<1x1x128xf32>,
    %66 = arith.mulf %60, %52 : vector<56x128xf32>
    %cst_57 = arith.constant dense<0.000000e+00> : vector<128xf32>
    %67 = vector.multi_reduction <add>, %66, %cst_57 [0] : vector<56x128xf32> to vector<128xf32>
    %68 = vector.shape_cast %67 : vector<128xf32> to vector<1x128xf32>
    %c0_58 = arith.constant 0 : index
    %c0_59 = arith.constant 0 : index
    %c0_60 = arith.constant 0 : index
    %69 = vector.load %arg6[%c0_58, %c0_59, %c0_60] : memref<1x1x128xf32, #tpu.memory_space<vmem>>, vector<1x1x128xf32>
    %70 = vector.shape_cast %69 : vector<1x1x128xf32> to vector<1x128xf32>
    %71 = vector.shape_cast %68 : vector<1x128xf32> to vector<1x1x128xf32>
    tpu.vector_store %arg6[%c0_58, %c0_59, %c0_60], %71 {strides = array<i32>} : memref<1x1x128xf32, #tpu.memory_space<vmem>>, vector<1x1x128xf32>,
    return
  }
  func.func @transform_0(%arg0: i32) -> (i32, i32, i32) {
    %c0_i32 = arith.constant 0 : i32
    %c0_i32_0 = arith.constant 0 : i32
    %c0_i32_1 = arith.constant 0 : i32
    return %arg0, %c0_i32, %c0_i32_0 : i32, i32, i32
  }
  func.func @transform_1(%arg0: i32) -> (i32, i32, i32) {
    %c0_i32 = arith.constant 0 : i32
    %c0_i32_0 = arith.constant 0 : i32
    %c0_i32_1 = arith.constant 0 : i32
    %c0_i32_2 = arith.constant 0 : i32
    return %c0_i32, %c0_i32_0, %c0_i32_1 : i32, i32, i32
  }
  func.func @transform_2(%arg0: i32) -> (i32, i32, i32) {
    %c0_i32 = arith.constant 0 : i32
    %c0_i32_0 = arith.constant 0 : i32
    %c0_i32_1 = arith.constant 0 : i32
    %c0_i32_2 = arith.constant 0 : i32
    return %c0_i32, %c0_i32_0, %c0_i32_1 : i32, i32, i32
  }
  func.func @transform_3(%arg0: i32) -> (i32, i32, i32) {
    %c0_i32 = arith.constant 0 : i32
    %c0_i32_0 = arith.constant 0 : i32
    %c0_i32_1 = arith.constant 0 : i32
    return %arg0, %c0_i32, %c0_i32_0 : i32, i32, i32
  }
  func.func @transform_4(%arg0: i32) -> (i32, i32, i32) {
    %c0_i32 = arith.constant 0 : i32
    %c0_i32_0 = arith.constant 0 : i32
    %c0_i32_1 = arith.constant 0 : i32
    return %arg0, %c0_i32, %c0_i32_0 : i32, i32, i32
  }
  func.func @transform_5(%arg0: i32) -> (i32, i32, i32) {
    %c0_i32 = arith.constant 0 : i32
    %c0_i32_0 = arith.constant 0 : i32
    %c0_i32_1 = arith.constant 0 : i32
    return %arg0, %c0_i32, %c0_i32_0 : i32, i32, i32
  }
}

</mosaic_0001>

<bundles_post_ra>
// kernel: tpu_custom_call.1
= control target key start
LH: loop header
LB: loop body
LE: loop exit
PB: predicated region body
PF: predicated region fallthrough
CT: control target
= control target key end

     0   :  { %11 = vsyncpa [#allocation3], 0  ;;  %s2495_s0 = inlined_call_operand.vmem [shape: bf16[2,256,4], index: 0, kind: input, shape index: {}]   ;;  %s2496_s1 = inlined_call_operand.vmem [shape: bf16[9,4,128], index: 1, kind: input, shape index: {}]   ;;  %s2497_s2 = inlined_call_operand.vmem [shape: f32[1,56,1], index: 2, kind: input, shape index: {}]   ;;  %s2498_s3 = inlined_call_operand.hbm [shape: bf16[2,56,128], index: 3, kind: output, shape index: {0}]   ;;  %s2499_s4 = inlined_call_operand.hbm [shape: f32[2,1,128], index: 4, kind: output, shape index: {1}]   ;;  %s2500_s5 = inlined_call_operand.hbm [shape: f32[2,1,128], index: 5, kind: output, shape index: {2}]  }
   0x1   :  { %13 = vsyncpa [#allocation3 + $0x1], 0 }
   0x2   :  { %14 = vsyncpa [#allocation5], 0 }
   0x3   :  { %16 = vsyncpa [#allocation5 + $0x1], 0  ;;  %s2126_s18 = smov 0   ;;  %s2128_s19 = smov 0  }
   0x4   :  { %s2130_s20 = smov 0   ;;  %s2132_s21 = smov 0  }
   0x5 LB: > { %s2147_s22 = sadd.s32 4294967295, %s2088_s21   ;;  %s1610_s23 = sadd.s32 4294967294, %s2088_s21   ;;  %s2088_s21 = sphi %s2132_s21, %s2506_s21   ;;  %s2084_s20 = sphi %s2130_s20, %s2505_s20   ;;  %s2080_s19 = sphi %s2128_s19, %s2504_s19   ;;  %s2076_s18 = sphi %s2126_s18, %s2503_s18  }
   0x6   : > { %s2151_s24 = sadd.s32 1, %s2088_s21   ;;  %s97_s25 = sadd.s32 1, %s2084_s20 }
   0x7   : > { %s94_s26 = ssub.s32 %s2088_s21, %s2151_s24  ;;  %p107_p0 = scmp.ne.s32.totalorder %s2084_s20, %s2080_s19 }
   0x8   : > { %p95_p1 = scmp.eq.s32.totalorder %s94_s26, 0  ;;  %p108_p2 = scmp.eq.s32.totalorder %s2147_s22, 1 }
   0x9   : > { %p113_p3 = scmp.ne.s32.totalorder %s2080_s19, %s2076_s18  ;;  %p114_p4 = scmp.eq.s32.totalorder %s1610_s23, 1 }
   0xa   : > { %s2164_s27 = scalar_select %p95_p1, %s2084_s20, %s97_s25  }
   0xb   : > { %p2166_p5 = por %p108_p2, %p107_p0  ;;  %p2170_p6 = por %p114_p4, %p113_p3 }
   0xc   : > { %p1613_p7 = scmp.ge.s32.totalorder %s2088_s21, 1  ;;  %p198_p8 = scmp.lt.s32.totalorder %s2088_s21, 3 }
   0xe   : > { %p199_p9 = pnand %p1613_p7, %p198_p8 }
   0xf   : > { %p234_p10 = scmp.lt.s32.totalorder (!%p199_p9), %s2147_s22, 1  ;;  %s1881_s16 = smul.u32 (!%p199_p9), 448, %s2147_s22 }
  0x10   : > { %202 = sbr.rel (%p199_p9) target bundleno = 359 (0x167), region = 32  ;;  %s2091_s8 = smov (!%p199_p9), [#allocation2]  }
  0x11   : > { %s2383_s30 = scalar_lea.hbm (!%p199_p9), %s2498_s3, %s1881_s16  ;;  %s1976_s9 = sshll.u32 (!%p199_p9), %s2091_s8, 4  ;;  %s1977_s9 = int_to_ptr.vmem [resolvable:$false] %s1976_s9 }
  0x12   : > { %s1978_s10 = scalar_lea.vmem (!%p199_p9), %s1977_s9, 896 }
  0x15   : > { %v1616_v0 = vld [vmem:[%s2496_s1 + $0x2] sm:$0x3]  ;;  %vm288_vm0 = vcmask 1041408   ;;  %v247_v2 = vld [vmem:[%s2496_s1] sm:$0x3]  ;;  %s235_s11 = scalar_select %p234_p10, %s2147_s22, 1 }
  0x16   : > { %1871 = vmatprep.subr.msk.bf16.mxu1 %vm288_vm0, %v1616_v0  ;;  %1870 = vmatprep.subr.msk.bf16.mxu0 %vm288_vm0, %v1616_v0  ;;  %v290_v1 = vsel %vm288_vm0, %v1616_v0, 0  ;;  %v1633_v3 = vld [vmem:[%s2496_s1 + $0x4] sm:$0x3]  ;;  %v2090_v5 = vmov 0   ;;  %vm275_vm1 = vcmask 31744   ;;  %v1366_v6 = vld [vmem:[%s2497_s2 + $0x8] sm:$0xff] }
  0x17   : > { %1869 = vmatpush3.bf16.msra.mxu1 %v290_v1  ;;  %1779 = vmatpush3.bf16.msra.mxu0 %v290_v1  ;;  %v1365_v4 = vld [vmem:[%s2497_s2] sm:$0xff]  ;;  %s1708_s14 = sshll.u32 %s235_s11, 7  ;;  %v1367_v7 = vld [vmem:[%s2497_s2 + $0x10] sm:$0xff]  ;;  %v387_v10 = vsel %vm288_vm0, %v247_v2, 0  ;;  %v528_v12 = vsel %vm288_vm0, %v1633_v3, 0 }
  0x18   : > { %1872 = vmatprep.subr.msk.bf16.mxu1 %vm288_vm0, %v247_v2  ;;  %1873 = vmatprep.subr.msk.bf16.mxu0 %vm288_vm0, %v1633_v3  ;;  %s2198_s17 = scalar_lea.vmem %s2495_s0, %s1708_s14  ;;  %v1642_v13 = vld [vmem:[%s2496_s1 + $0x6] sm:$0x3]  ;;  %v1651_v14 = vld [vmem:[%s2496_s1 + $0x8] sm:$0x3]  ;;  %vm483_vm2 = vsmask.f32 7424 }
  0x19   : > { %1934 = vset.pattern.permute.xlu0 %v2090_v5  ;;  %1935 = vset.pattern.permute.xlu1 %v2090_v5  ;;  %v1936_v8 = vld [vmem:[%s2198_s17 + $0x20] sm:$0xff]   ;;  %v1937_v9 = vld [vmem:[%s2198_s17 + $0x30] sm:$0xff]   ;;  %v1938_v11 = vld [vmem:[%s2198_s17 + $0x28] sm:$0xff]   ;;  %v641_v35 = vsel %vm288_vm0, %v1642_v13, 0  ;;  %v754_v47 = vsel %vm288_vm0, %v1651_v14, 0 }
  0x1a   : > { %1374 = vperm.xlu0 %1934, %v1365_v4   ;;  %1384 = vperm.xlu1 %1935, %v1367_v7   ;;  %v1939_v15 = vld [vmem:[%s2198_s17 + $0x38] ss:$0 sps:$4 sm:$0xff]   ;;  %v1940_v16 = vld [vmem:[%s2198_s17] sm:$0xff]   ;;  %v2228_v19 = vld [vmem:[%s2198_s17 + $0x8] sm:$0xf] }
  0x1b   : > { %1780 = vmatprep.mubr.msk.bf16.mxu0 %vm275_vm1, %v1936_v8  ;;  %1784 = vmatprep.mubr.msk.bf16.mxu1 %vm275_vm1, %v1937_v9  ;;  %v453_v17 = vld [vmem:[%s2198_s17] sm:$0xf]  ;;  %v2225_v18 = vld [vmem:[%s2198_s17 + $0x4] sm:$0xf]  ;;  %v2231_v20 = vld [vmem:[%s2198_s17 + $0xc] sm:$0xf] }
  0x1c   : > { %1781 = vmatmul.mubr.msk.bf16.vlgmr.msra.gmra.mxu0 %vm275_vm1, %v1938_v11  ;;  %1785 = vmatmul.mubr.msk.bf16.vlgmr.msra.gmra.mxu1 %vm275_vm1, %v1939_v15  ;;  %v2235_v21 = vld [vmem:[%s2198_s17 + $0x10] sm:$0xf]  ;;  %v1634_v22 = vcombine.low %v453_v17, %v2225_v18  ;;  %v1635_v23 = vcombine.low %v2228_v19, %v2231_v20  ;;  %v2242_v24 = vld [vmem:[%s2198_s17 + $0x14] sm:$0xf]  ;;  %v1944_v29 = vld [vmem:[%s2198_s17 + $0x8] sm:$0xff]  }
  0x1d   : > { %1799 = vmatpush3.bf16.msra.mxu0 %v528_v12  ;;  %1789 = vmatpush3.bf16.msra.mxu1 %v387_v10  ;;  %v1636_v30 = vcombine.low %v2235_v21, %v2242_v24  ;;  %v2249_v31 = vld [vmem:[%s2198_s17 + $0x18] sm:$0xf]  ;;  %v460_v32 = vld [vmem:[%s2198_s17 + $0x1c] sm:$0x1]  ;;  %v1946_v36 = vld [vmem:[%s2198_s17 + $0x10] sm:$0xff]  }
  0x1e   : > { %1379 = vperm.xlu0 %1934, %v1366_v6   ;;  %1790 = vmatprep.mubr.msk.bf16.mxu1 %vm275_vm1, %v1940_v16  ;;  %v485_v25 = vshrl.u32 %v1634_v22, 16  ;;  %v487_v26 = vshll.u32 %v1634_v22, 16  ;;  %v492_v27 = vshll.u32 %v1635_v23, 16  ;;  %v496_v28 = vshrl.u32 %v1635_v23, 16  ;;  %v1660_v43 = vld [vmem:[%s2496_s1 + $0xa] sm:$0x3] }
  0x1f   : > { %1874 = vmatprep.subr.msk.bf16.mxu1 %vm288_vm0, %v1642_v13  ;;  %1875 = vmatprep.subr.msk.bf16.mxu0 %vm288_vm0, %v1651_v14  ;;  %v1637_v37 = vcombine.low %v2249_v31, %v460_v32  ;;  %v500_v38 = vshll.u32 %v1636_v30, 16  ;;  %v504_v39 = vshrl.u32 %v1636_v30, 16  ;;  %v1669_v45 = vld [vmem:[%s2496_s1 + $0xc] sm:$0x3]  ;;  %v1948_v53 = vld [vmem:[%s2198_s17 + $0x18] ss:$0 sps:$4 sm:$0xff]  }
  0x20   : > { %v489_v33 = vrot.slane %v487_v26, 1  ;;  %v494_v34 = vrot.slane %v492_v27, 1  ;;  %v1949_v54 = vld [vmem:[%s2198_s17 + $0x40] sm:$0xff]   ;;  %v1958_v58 = vld [vmem:[%s2198_s17 + $0x48] sm:$0xff]   ;;  %v901_v61 = vsel %vm288_vm0, %v1660_v43, 0  ;;  %v1953_v62 = vld [vmem:[%s2198_s17 + $0x50] sm:$0xff]   ;;  %v1670_v27 = vcombine.low %v2225_v18, %v2228_v19 }
  0x21   : > { %v508_v42 = vshll.u32 %v1637_v37, 16  ;;  %v502_v44 = vrot.slane %v500_v38, 1  ;;  %v512_v51 = vshrl.u32 %v1637_v37, 16  ;;  %v1957_v56 = vld [vmem:[%s2198_s17 + $0x40] sm:$0xff]   ;;  %v1951_v60 = vld [vmem:[%s2198_s17 + $0x48] sm:$0xff]   ;;  %v865_v3 = vshll.u32 %v1958_v58, 16 }
  0x22   : > { %v490_v40 = vor.u32 %v489_v33, %v485_v25  ;;  %v498_v41 = vor.u32 %v496_v28, %v494_v34  ;;  %v1950_v57 = vld [vmem:[%s2198_s17 + $0x60] sm:$0xff]   ;;  %v860_v59 = vshll.u32 %v1957_v56, 16  ;;  %v1678_v63 = vld [vmem:[%s2496_s1 + $0xe] sm:$0x3]  ;;  %v858_v1 = vshrl.u32 %v1957_v56, 16  ;;  %v1954_v4 = vld [vmem:[%s2198_s17 + $0x70] sm:$0xff]  }
  0x23   : > { %v510_v48 = vrot.slane %v508_v42, 1  ;;  %v506_v50 = vor.u32 %v504_v39, %v502_v44  ;;  %v1952_v0 = vld [vmem:[%s2198_s17 + $0x68] sm:$0xff]   ;;  %v996_v5 = vsel %vm288_vm0, %v1669_v45, 0  ;;  %v1960_v6 = vld [vmem:[%s2198_s17 + $0x50] sm:$0xff]   ;;  %v1961_v8 = vld [vmem:[%s2198_s17 + $0x58] sm:$0x1f]   ;;  %v1671_v19 = vcombine.low %v2231_v20, %v2235_v21 }
  0x24   : > { %1791 = vmatmul.mubr.msk.bf16.vlgmr.msra.gmra.mxu1 %vm275_vm1, %v1944_v29  ;;  %v495_v46 = vsel %vm483_vm2, %v490_v40, %v494_v34  ;;  %v503_v49 = vsel %vm483_vm2, %v498_v41, %v502_v44  ;;  %v862_v2 = vrot.slane %v860_v59, 1  ;;  %v1687_v7 = vld [vmem:[%s2496_s1 + $0x10] sm:$0x3]  ;;  %v867_v10 = vrot.slane %v865_v3, 1  ;;  %v1369_v11 = vld [vmem:[%s2497_s2 + $0x20] sm:$0xff]  ;;  %v1368_v14 = vld [vmem:[%s2497_s2 + $0x18] sm:$0xff] }
  0x25   : > { %1809 = vmatpush3.bf16.msra.mxu1 %v641_v35  ;;  %1794 = vmatprep.mubr.msk.bf16.mxu1 %vm275_vm1, %v1946_v36  ;;  %v511_v52 = vsel %vm483_vm2, %v506_v50, %v510_v48  ;;  %v514_v55 = vor.u32 %v512_v51, %v510_v48  ;;  %v1955_v12 = vld [vmem:[%s2198_s17 + $0x58] ss:$0 sps:$4 sm:$0xff]   ;;  %v873_v13 = vshll.u32 %v1960_v6, 16  ;;  %v869_v15 = vshrl.u32 %v1958_v58, 16  ;;  %v1371_v16 = vld [vmem:[%s2497_s2 + $0x30] sm:$0xff]  ;;  %v1370_v25 = vld [vmem:[%s2497_s2 + $0x28] sm:$0xff] }
  0x26   : > { %1800 = vmatprep.mubr.msk.bf16.mxu0 %vm275_vm1, %v495_v46  ;;  %1876 = vmatprep.subr.msk.bf16.mxu1 %vm288_vm0, %v1660_v43  ;;  %v863_v9 = vor.u32 %v862_v2, %v858_v1  ;;  %v877_v22 = vshrl.u32 %v1960_v6, 16  ;;  %v881_v23 = vshll.u32 %v1961_v8, 16  ;;  %v1956_v26 = vld [vmem:[%s2198_s17 + $0x78] ss:$0 sps:$4 sm:$0xff]   ;;  %v1965_v30 = vld [vmem:[%s2198_s17 + $0x4] sm:$0xff]   ;;  %v1966_v35 = vld [vmem:[%s2198_s17 + $0xc] sm:$0xff]   ;;  %v1672_v38 = vcombine.low %v2242_v24, %v2249_v31 }
  0x27   : > { %1801 = vmatmul.mubr.msk.bf16.vlgmr.msra.gmra.mxu0 %vm275_vm1, %v503_v49  ;;  %1394 = vperm.xlu0 %1934, %v1369_v11   ;;  %v875_v28 = vrot.slane %v873_v13, 1  ;;  %v871_v29 = vor.u32 %v869_v15, %v867_v10  ;;  %v1215_v36 = vshll.u32 %v1965_v30, 16  ;;  %v1109_v37 = vsel %vm288_vm0, %v1678_v63, 0  ;;  %v1968_v44 = vld [vmem:[%s2198_s17 + $0x14] sm:$0xff]   ;;  %v1964_v21 = vld [vmem:[%s2198_s17 + $0x24] sm:$0xff]  }
  0x28   : > { %1819 = vmatpush3.bf16.msra.mxu0 %v754_v47  ;;  %1804 = vmatprep.mubr.msk.bf16.mxu0 %vm275_vm1, %v511_v52  ;;  %v868_v17 = vsel %vm483_vm2, %v863_v9, %v867_v10  ;;  %v883_v33 = vrot.slane %v881_v23, 1  ;;  %v885_v39 = vshrl.u32 %v1961_v8, 16  ;;  %v1256_v40 = vsel %vm288_vm0, %v1687_v7, 0  ;;  %v1963_v46 = vld [vmem:[%s2198_s17 + $0x1c] ss:$0 sps:$4 sm:$0xff]  }
  0x29   : > { %1877 = vmatprep.subr.msk.bf16.mxu0 %vm288_vm0, %v1669_v45  ;;  %1389 = vperm.xlu1 %1935, %v1368_v14   ;;  %v879_v32 = vor.u32 %v877_v22, %v875_v28  ;;  %v876_v34 = vsel %vm483_vm2, %v871_v29, %v875_v28  ;;  %v1213_v41 = vshrl.u32 %v1965_v30, 16  ;;  %v1217_v42 = vrot.slane %v1215_v36, 1  ;;  %v1970_v45 = vld [vmem:[%s2198_s17 + $0x1c] sm:$0x1f]  }
  0x2a   : > { %v1220_v43 = vshll.u32 %v1966_v35, 16  ;;  %v887_v20 = vor.u32 %v885_v39, %v883_v33  ;;  %v1228_v47 = vshll.u32 %v1968_v44, 16  ;;  %v1224_v48 = vshrl.u32 %v1966_v35, 16 }
  0x2b   : > { %1404 = vperm.xlu0 %1934, %v1371_v16   ;;  %v884_v18 = vsel %vm483_vm2, %v879_v32, %v883_v33  ;;  %v1218_v24 = vor.u32 %v1217_v42, %v1213_v41  ;;  %v1232_v50 = vshrl.u32 %v1968_v44, 16  ;;  %v1236_v51 = vshll.u32 %v1970_v45, 16 }
  0x2c   : > { %1795 = vmatmul.mubr.msk.bf16.gmra.mxu1 %vm275_vm1, %v1948_v53  ;;  %v1222_v31 = vrot.slane %v1220_v43, 1  ;;  %v1230_v52 = vrot.slane %v1228_v47, 1 }
  0x2d   : > { %1810 = vmatprep.mubr.msk.bf16.mxu1 %vm275_vm1, %v1949_v54  ;;  %1399 = vperm.xlu1 %1935, %v1370_v25   ;;  %v1967_v54 = vld [vmem:[%s2198_s17 + $0x2c] sm:$0xff]  }
  0x2e   : > { %v1223_v49 = vsel %vm483_vm2, %v1218_v24, %v1222_v31  ;;  %v1226_v53 = vor.u32 %v1224_v48, %v1222_v31  ;;  %v1234_v56 = vor.u32 %v1232_v50, %v1230_v52 }
  0x2f   : > { %1805 = vmatmul.mubr.msk.bf16.gmra.mxu0 %vm275_vm1, %v514_v55  ;;  %v1969_v55 = vld [vmem:[%s2198_s17 + $0x34] sm:$0xff]  }
  0x30   : > { %1820 = vmatprep.mubr.msk.bf16.mxu0 %vm275_vm1, %v1950_v57  ;;  %v1238_v57 = vrot.slane %v1236_v51, 1  ;;  %v1231_v58 = vsel %vm483_vm2, %v1226_v53, %v1230_v52 }
  0x32   : > { %v1239_v59 = vsel %vm483_vm2, %v1234_v56, %v1238_v57 }
  0x34   : > { %1811 = vmatmul.mubr.msk.bf16.vlgmr.msra.gmra.mxu1 %vm275_vm1, %v1951_v60  ;;  %v1240_v60 = vshrl.u32 %v1970_v45, 16 }
  0x35   : > { %1829 = vmatpush3.bf16.msra.mxu1 %v901_v61  ;;  %1814 = vmatprep.mubr.msk.bf16.mxu1 %vm275_vm1, %v1953_v62  ;;  %v1971_v61 = vld [vmem:[%s2198_s17 + $0x3c] ss:$0 sps:$4 sm:$0xff]   ;;  %s2362_s17 = sand.u32 1, %s2080_s19  }
  0x36   : > { %1878 = vmatprep.subr.msk.bf16.mxu1 %vm288_vm0, %v1678_v63  ;;  %v1242_v62 = vor.u32 %v1240_v60, %v1238_v57  ;;  %s1880_s13 = smul.u32 28, %s2362_s17  ;;  %s1448_s6 = scalar_lea.sflag [#allocation3], %s2362_s17 }
  0x37   : > { %1821 = vmatmul.mubr.msk.bf16.vlgmr.msra.gmra.mxu0 %vm275_vm1, %v1952_v0 }
  0x38   : > { %1839 = vmatpush3.bf16.msra.mxu0 %v996_v5  ;;  %1824 = vmatprep.mubr.msk.bf16.mxu0 %vm275_vm1, %v1954_v4  ;;  %s2366_s14 = scalar_lea.vmem [#allocation2], %s1880_s13 }
  0x39   : > { %1879 = vmatprep.subr.msk.bf16.mxu0 %vm288_vm0, %v1687_v7  ;;  %s1469_s15 = sshll.u32 %s2366_s14, 4  ;;  %s2378_s15 = int_to_ptr.vmem [resolvable:$true] %s1469_s15 }
  0x3a   : > { %s1972_s7 = scalar_lea.vmem %s2378_s15, 448  ;;  %p1979_p0 = scmp.lt.s32.totalorder %s2378_s15, %s1977_s9 }
  0x3b   : > { %p1973_p11 = scmp.ne.s32.totalorder %s2378_s15, %s1972_s7  ;;  %p1980_p1 = scmp.lt.s32.totalorder %s1978_s10, %s1972_s7 }
  0x3c   : > { %1815 = vmatmul.mubr.msk.bf16.gmra.mxu1 %vm275_vm1, %v1955_v12 }
  0x3d   : > { %1830 = vmatprep.mubr.msk.bf16.mxu1 %vm275_vm1, %v868_v17  ;;  %p1974_p12 = pnand %p1973_p11, %p2166_p5  ;;  %p1981_p2 = por %p1980_p1, %p1979_p0 }
  0x3f   : > { %1825 = vmatmul.mubr.msk.bf16.gmra.mxu0 %vm275_vm1, %v1956_v26  ;;  %p1975_p13 = pneg %p1974_p12 }
  0x40   : > { %1840 = vmatprep.mubr.msk.bf16.mxu0 %vm275_vm1, %v1670_v27 }
  0x41   : > { %p1982_p3 = pnand %p1981_p2, %p1975_p13 }
  0x44   : > { %1831 = vmatmul.mubr.msk.bf16.vlgmr.msra.gmra.mxu1 %vm275_vm1, %v876_v34 }
  0x45   : > { %1849 = vmatpush3.bf16.msra.mxu1 %v1109_v37  ;;  %1834 = vmatprep.mubr.msk.bf16.mxu1 %vm275_vm1, %v884_v18 }
  0x47   : > { %1841 = vmatmul.mubr.msk.bf16.vlgmr.msra.gmra.mxu0 %vm275_vm1, %v1671_v19 }
  0x48   : > { %1859 = vmatpush3.bf16.msra.mxu0 %v1256_v40  ;;  %1844 = vmatprep.mubr.msk.bf16.mxu0 %vm275_vm1, %v1672_v38 }
  0x4c   : > { %1835 = vmatmul.mubr.msk.bf16.gmra.mxu1 %vm275_vm1, %v887_v20 }
  0x4d   : > { %1850 = vmatprep.mubr.msk.bf16.mxu1 %vm275_vm1, %v1964_v21 }
  0x4f   : > { %1845 = vmatmul.mubr.msk.bf16.gmra.mxu0 %vm275_vm1, %v1963_v46 }
  0x50   : > { %1860 = vmatprep.mubr.msk.bf16.mxu0 %vm275_vm1, %v1223_v49 }
  0x54   : > { %1851 = vmatmul.mubr.msk.bf16.vlgmr.msra.gmra.mxu1 %vm275_vm1, %v1967_v54 }
  0x55   : > { %1854 = vmatprep.mubr.msk.bf16.mxu1 %vm275_vm1, %v1969_v55 }
  0x57   : > { %1861 = vmatmul.mubr.msk.bf16.vlgmr.msra.gmra.mxu0 %vm275_vm1, %v1231_v58 }
  0x58   : > { %1864 = vmatprep.mubr.msk.bf16.mxu0 %vm275_vm1, %v1239_v59 }
  0x5c   : > { %1855 = vmatmul.mubr.msk.bf16.gmra.mxu1 %vm275_vm1, %v1971_v61 }
  0x5f   : > { %1865 = vmatmul.mubr.msk.bf16.gmra.mxu0 %vm275_vm1, %v1242_v62 }
  0xdc   : > { %v1782_v63 = vpop.f32.mrf.mxu0  ;;  %v1786_v0 = vpop.f32.mrf.mxu1 }
  0xde   : > { %v326_v1 = vpop.f32.mrf.mxu0  ;;  %v342_v2 = vpop.f32.mrf.mxu1 }
  0xe0   : > { %v1783_v3 = vpop.f32.mrf.mxu0  ;;  %v1787_v4 = vpop.f32.mrf.mxu1 }
  0xe2   : > { %v2356_v5 = vpop.f32.mrf.mxu1  ;;  %v329_v6 = vpop.f32.mrf.mxu0 }
  0xe4   : > { %v1792_v7 = vpop.f32.mrf.mxu1 }
  0xe5   : > { %v432_v20 = vadd.f32 %v1792_v7, %v1782_v63 }
  0xe6   : > { %v423_v8 = vpop.f32.mrf.mxu1 }
  0xe7   : > { %v1802_v9 = vpop.f32.mrf.mxu0  ;;  %v424_v43 = vadd.f32 %v423_v8, %v326_v1 }
  0xe8   : > { %v1793_v10 = vpop.f32.mrf.mxu1  ;;  %v596_v49 = vadd.f32 %v1802_v9, %v432_v20 }
  0xe9   : > { %v564_v11 = vpop.f32.mrf.mxu0  ;;  %v435_v24 = vadd.f32 %v1793_v10, %v1783_v3 }
  0xea   : > { %v426_v12 = vpop.f32.mrf.mxu1  ;;  %v594_v46 = vadd.f32 %v564_v11, %v424_v43 }
  0xeb   : > { %v1803_v13 = vpop.f32.mrf.mxu0  ;;  %v427_v47 = vadd.f32 %v426_v12, %v329_v6 }
  0xec   : > { %v1796_v14 = vpop.f32.mrf.mxu1  ;;  %v597_v51 = vadd.f32 %v1803_v13, %v435_v24 }
  0xed   : > { %v567_v15 = vpop.f32.mrf.mxu0  ;;  %v448_v52 = vadd.f32 %v1796_v14, %v1786_v0 }
  0xee   : > { %v439_v16 = vpop.f32.mrf.mxu1  ;;  %v595_v58 = vadd.f32 %v567_v15, %v427_v47 }
  0xef   : > { %v1806_v17 = vpop.f32.mrf.mxu0  ;;  %v440_v55 = vadd.f32 %v439_v16, %v342_v2 }
  0xf0   : > { %v1797_v22 = vpop.f32.mrf.mxu1  ;;  %v600_v62 = vadd.f32 %v1806_v17, %v448_v52  ;;  %v1375_v17 = vpop.permute.xlu0 %1374 }
  0xf1   : > { %v580_v23 = vpop.f32.mrf.mxu0 }
  0xf2   : > { %v442_v25 = vpop.f32.mrf.mxu1  ;;  %v598_v4 = vadd.f32 %v580_v23, %v440_v55 }
  0xf3   : > { %v1807_v26 = vpop.f32.mrf.mxu0  ;;  %v443_v8 = vadd.f32 %v442_v25, %v2356_v5 }
  0xf4   : > { %v1812_v27 = vpop.f32.mrf.mxu1  ;;  %v1380_v43 = vpop.permute.xlu0 %1379 }
  0xf5   : > { %v583_v28 = vpop.f32.mrf.mxu0  ;;  %v709_v56 = vadd.f32 %v1812_v27, %v596_v49 }
  0xf6   : > { %v677_v29 = vpop.f32.mrf.mxu1  ;;  %v599_v26 = vadd.f32 %v583_v28, %v443_v8 }
  0xf7   : > { %v1822_v30 = vpop.f32.mrf.mxu0  ;;  %v707_v53 = vadd.f32 %v677_v29, %v594_v46 }
  0xf8   : > { %v1813_v32 = vpop.f32.mrf.mxu1  ;;  %v822_v6 = vadd.f32 %v1822_v30, %v709_v56 }
  0xf9   : > { %v790_v33 = vpop.f32.mrf.mxu0  ;;  %v710_v59 = vadd.f32 %v1813_v32, %v597_v51 }
  0xfa   : > { %v680_v34 = vpop.f32.mrf.mxu1  ;;  %v820_v63 = vadd.f32 %v790_v33, %v707_v53 }
  0xfb   : > { %v1823_v35 = vpop.f32.mrf.mxu0  ;;  %v708_v1 = vadd.f32 %v680_v34, %v595_v58 }
  0xfc   : > { %v1816_v36 = vpop.f32.mrf.mxu1  ;;  %v823_v9 = vadd.f32 %v1823_v35, %v710_v59 }
  0xfd   : > { %v793_v37 = vpop.f32.mrf.mxu0  ;;  %v713_v0 = vadd.f32 %v1816_v36, %v600_v62 }
  0xfe   : > { %v693_v18 = vpop.f32.mrf.mxu1  ;;  %v821_v14 = vadd.f32 %v793_v37, %v708_v1 }
  0xff   : > { %v1826_v19 = vpop.f32.mrf.mxu0  ;;  %v711_v2 = vadd.f32 %v693_v18, %v598_v4 }
 0x100   : > { %v1817_v38 = vpop.f32.mrf.mxu1  ;;  %v826_v27 = vadd.f32 %v1826_v19, %v713_v0 }
 0x101   : > { %v806_v39 = vpop.f32.mrf.mxu0 }
 0x102   : > { %v696_v40 = vpop.f32.mrf.mxu1  ;;  %v824_v32 = vadd.f32 %v806_v39, %v711_v2 }
 0x103   : > { %v1827_v41 = vpop.f32.mrf.mxu0  ;;  %v712_v33 = vadd.f32 %v696_v40, %v599_v26 }
 0x104   : > { %v1832_v42 = vpop.f32.mrf.mxu1 }
 0x105   : > { %v2358_v44 = vpop.f32.mrf.mxu0  ;;  %v969_v12 = vadd.f32 %v1832_v42, %v822_v6 }
 0x106   : > { %v937_v21 = vpop.f32.mrf.mxu1 }
 0x107   : > { %v1842_v31 = vpop.f32.mrf.mxu0  ;;  %v967_v10 = vadd.f32 %v937_v21, %v820_v63  ;;  %v825_v21 = vadd.f32 %v2358_v44, %v712_v33 }
 0x108   : > { %v1833_v45 = vpop.f32.mrf.mxu1  ;;  %v1064_v5 = vadd.f32 %v1842_v31, %v969_v12  ;;  %v1385_v31 = vpop.permute.xlu1 %1384 }
 0x109   : > { %v1032_v48 = vpop.f32.mrf.mxu0  ;;  %v970_v15 = vadd.f32 %v1833_v45, %v823_v9 }
 0x10a   : > { %v940_v50 = vpop.f32.mrf.mxu1  ;;  %v1062_v23 = vadd.f32 %v1032_v48, %v967_v10 }
 0x10b   : > { %v1843_v54 = vpop.f32.mrf.mxu0  ;;  %v968_v29 = vadd.f32 %v940_v50, %v821_v14 }
 0x10c   : > { %v1836_v57 = vpop.f32.mrf.mxu1  ;;  %v1065_v34 = vadd.f32 %v1843_v54, %v970_v15  ;;  %v1390_v4 = vpop.permute.xlu1 %1389 }
 0x10d   : > { %v1035_v60 = vpop.f32.mrf.mxu0  ;;  %v973_v35 = vadd.f32 %v1836_v57, %v826_v27 }
 0x10e   : > { %v953_v61 = vpop.f32.mrf.mxu1  ;;  %v1063_v41 = vadd.f32 %v1035_v60, %v968_v29  ;;  %v1395_v60 = vpop.permute.xlu0 %1394 }
 0x10f   : > { %v1846_v3 = vpop.f32.mrf.mxu0  ;;  %v971_v42 = vadd.f32 %v953_v61, %v824_v32 }
 0x110   : > { %v1837_v7 = vpop.f32.mrf.mxu1  ;;  %v1068_v24 = vadd.f32 %v1846_v3, %v973_v35  ;;  %v1400_v32 = vpop.permute.xlu1 %1399 }
 0x111   : > { %v1048_v11 = vpop.f32.mrf.mxu0 }
 0x112   : > { %v956_v13 = vpop.f32.mrf.mxu1  ;;  %v1066_v49 = vadd.f32 %v1048_v11, %v971_v42  ;;  %v1405_v26 = vpop.permute.xlu0 %1404 }
 0x113   : > { %v1847_v16 = vpop.f32.mrf.mxu0  ;;  %v972_v50 = vadd.f32 %v956_v13, %v825_v21 }
 0x114   : > { %v1852_v22 = vpop.f32.mrf.mxu1 }
 0x115   : > { %v1051_v30 = vpop.f32.mrf.mxu0  ;;  %v1177_v18 = vadd.f32 %v1852_v22, %v1064_v5 }
 0x116   : > { %v1145_v25 = vpop.f32.mrf.mxu1  ;;  %v1067_v1 = vadd.f32 %v1051_v30, %v972_v50 }
 0x117   : > { %v1862_v36 = vpop.f32.mrf.mxu0  ;;  %v1175_v37 = vadd.f32 %v1145_v25, %v1062_v23 }
 0x118   : > { %v1853_v38 = vpop.f32.mrf.mxu1  ;;  %v1324_v46 = vadd.f32 %v1862_v36, %v1177_v18 }
 0x119   : > { %v1292_v28 = vpop.f32.mrf.mxu0  ;;  %v1178_v19 = vadd.f32 %v1853_v38, %v1065_v34 }
 0x11a   : > { %v1322_v20 = vadd.f32 %v1292_v28, %v1175_v37  ;;  %v1148_v39 = vpop.f32.mrf.mxu1  ;;  %v1409_v59 = vmul.f32 %v1385_v31, %v1324_v46 }
 0x11b   : > { %v1863_v45 = vpop.f32.mrf.mxu0  ;;  %v1176_v40 = vadd.f32 %v1148_v39, %v1063_v41 }
 0x11c   : > { %v1325_v47 = vadd.f32 %v1863_v45, %v1178_v19  ;;  %v1856_v48 = vpop.f32.mrf.mxu1  ;;  %v1407_v51 = vmul.f32 %v1375_v17, %v1322_v20  ;;  %v1429_v13 = vmul.f32 %v1409_v59, %v1324_v46 }
 0x11d   : > { %v1295_v52 = vpop.f32.mrf.mxu0  ;;  %v1181_v53 = vadd.f32 %v1856_v48, %v1068_v24 }
 0x11e   : > { %v1724_v54 = vpack.c.bf16 %v1325_v47, %v1324_v46  ;;  %v1323_v55 = vadd.f32 %v1295_v52, %v1176_v40  ;;  %v1161_v56 = vpop.f32.mrf.mxu1  ;;  %v1427_v3 = vmul.f32 %v1407_v51, %v1322_v20  ;;  %v1410_v7 = vmul.f32 %v1390_v4, %v1325_v47 }
 0x11f   : > { %v1866_v57 = vpop.f32.mrf.mxu0  ;;  %v1179_v58 = vadd.f32 %v1161_v56, %v1066_v49 }
 0x120   : > { %1731 = vst [vmem:[%s2366_s14 + $0x8] sm:$0xff] %v1724_v54   ;;  %v1719_v44 = vpack.c.bf16 %v1323_v55, %v1322_v20  ;;  %v1408_v61 = vmul.f32 %v1380_v43, %v1323_v55  ;;  %v2369_v62 = vadd.f32 %v1866_v57, %v1181_v53  ;;  %v1857_v63 = vpop.f32.mrf.mxu1  ;;  %v1430_v22 = vmul.f32 %v1410_v7, %v1325_v47 }
 0x121   : > { %v1308_v6 = vpop.f32.mrf.mxu0 }
 0x122   : > { %1720 = vst [vmem:[%s2366_s14] sm:$0xff] %v1719_v44   ;;  %v1414_v8 = vadd.f32 %v1408_v61, %v1407_v51  ;;  %v1428_v9 = vmul.f32 %v1408_v61, %v1323_v55  ;;  %v1715_v0 = vpack.c.bf16 %v2369_v62, %v2369_v62  ;;  %v1164_v10 = vpop.f32.mrf.mxu1  ;;  %v1326_v11 = vadd.f32 %v1308_v6, %v1179_v58 }
 0x123   : > { %v1867_v2 = vpop.f32.mrf.mxu0  ;;  %v1180_v12 = vadd.f32 %v1164_v10, %v1067_v1  ;;  %v1413_v30 = vmul.f32 %v1405_v26, %v2369_v62 }
 0x124   : > { %v1415_v14 = vadd.f32 %v1414_v8, %v1409_v59  ;;  %v1434_v15 = vadd.f32 %v1428_v9, %v1427_v3  ;;  %1364 = vst [vmem:[%s2366_s14 + $0x18] sm:$0xf] %v1715_v0  ;;  %v1411_v16 = vmul.f32 %v1395_v60, %v1326_v11 }
 0x125   : > { %v1311_v17 = vpop.f32.mrf.mxu0 }
 0x126   : > { %v1435_v27 = vadd.f32 %v1434_v15, %v1429_v13  ;;  %v1416_v23 = vadd.f32 %v1415_v14, %v1410_v7  ;;  %v1327_v29 = vadd.f32 %v1311_v17, %v1180_v12  ;;  %v1431_v5 = vmul.f32 %v1411_v16, %v1326_v11 }
 0x128   : > { %v1417_v25 = vadd.f32 %v1416_v23, %v1411_v16  ;;  %v1436_v33 = vadd.f32 %v1435_v27, %v1430_v22  ;;  %v1729_v34 = vpack.c.bf16 %v1327_v29, %v1326_v11  ;;  %v1412_v35 = vmul.f32 %v1400_v32, %v1327_v29 }
 0x12a   : > { %v1437_v36 = vadd.f32 %v1436_v33, %v1431_v5  ;;  %1732 = vst [vmem:[%s2366_s14 + $0x10] sm:$0xff] %v1729_v34   ;;  %v1418_v37 = vadd.f32 %v1417_v25, %v1412_v35  ;;  %v1432_v18 = vmul.f32 %v1412_v35, %v1327_v29 }
 0x12b   : > { %1985 = shalt.err (!%p1982_p3)
}
 0x12c   : > { %s1986_s11 = scalar_lea.hbm %s2383_s30, 448  ;;  %s1990_s14 = scalar_lea.hbm %s2498_s3, 896 }
 0x12d   : > { %p1987_p4 = scmp.ne.s32.totalorder %s2383_s30, %s1986_s11  ;;  %p1991_p9 = scmp.lt.s32.totalorder %s2383_s30, %s2498_s3 }
 0x12e   : > { %p1992_p10 = scmp.lt.s32.totalorder %s1990_s14, %s1986_s11 }
 0x12f   : > { %p1988_p7 = pnand %p1987_p4, %p2166_p5 }
 0x130   : > { %p1993_p11 = por %p1992_p10, %p1991_p9 }
 0x131   : > { %p1989_p8 = pneg %p1988_p7 }
 0x133   : > { %p1994_p12 = pnand %p1993_p11, %p1989_p8 }
 0x135   : > { %1997 = shalt.err (!%p1994_p12)
}
 0x136   : > { %s2092_s26 = smov 64   ;;  %s2093_s7 = smov 4   ;;  %v1433_v38 = vmul.f32 %v1413_v30, %v2369_v62  ;;  %v1419_v41 = vadd.f32 %v1418_v37, %v1413_v30  ;;  %v1438_v42 = vadd.f32 %v1437_v36, %v1432_v18 }
 0x137   : > { %1882 = dma.vmem_to_hbm [thread:$0]  (%p2166_p5), %s2378_s15, 448, %s2383_s30, %s1448_s6, %s2092_s26, %s2092_s26, %s2093_s7  }
 0x138   : > { %v1420_v28 = vrot.slane %v1419_v41, 4  ;;  %v1439_v19 = vadd.f32 %v1438_v42, %v1433_v38  ;;  %s1452_s8 = sand.u32 1, %s2147_s22   ;;  %s1704_s9 = sshll.u32 %s2147_s22, 4 }
 0x139   : > { %s227_s10 = scalar_lea.vmem [#allocation4], %s2362_s17  ;;  %s233_s15 = scalar_lea.vmem [#allocation6], %s2362_s17 }
 0x13a   : > { %v1440_v43 = vrot.slane %v1439_v19, 4  ;;  %v1421_v20 = vadd.f32 %v1420_v28, %v1419_v41  ;;  %s1485_s11 = sshll.u32 %s227_s10, 4  ;;  %s1498_s30 = sshll.u32 %s233_s15, 4  ;;  %s2421_s11 = int_to_ptr.vmem [resolvable:$true] %s1485_s11  ;;  %s2428_s30 = int_to_ptr.vmem [resolvable:$true] %s1498_s30 }
 0x13b   : > { %s2419_s13 = scalar_lea.hbm %s2499_s4, %s1704_s9  ;;  %s2426_s16 = scalar_lea.hbm %s2500_s5, %s1704_s9 }
 0x13c   : > { %v1441_v39 = vadd.f32 %v1440_v43, %v1439_v19  ;;  %v1422_v21 = vrot.slane %v1421_v20, 2  ;;  %s2430_s25 = scalar_lea.sflag [#allocation5], %s1452_s8  ;;  %s1998_s26 = scalar_lea.vmem %s2421_s11, 16 }
 0x13d   : > { %p1999_p13 = scmp.ne.s32.totalorder %s2421_s11, %s1998_s26  ;;  %s2094_s7 = smov [#allocation4]  }
 0x13e   : > { %v1423_v24 = vadd.f32 %v1422_v21, %v1421_v20  ;;  %v1442_v31 = vrot.slane %v1441_v39, 2  ;;  %s2002_s6 = sshll.u32 %s2094_s7, 4  ;;  %s2003_s6 = int_to_ptr.vmem [resolvable:$false] %s2002_s6 }
 0x13f   : > { %p2000_p0 = pnand %p1999_p13, %p2166_p5  ;;  %s2004_s12 = scalar_lea.vmem %s2003_s6, 32 }
 0x140   : > { %v1424_v45 = vrot.slane %v1423_v24, 1  ;;  %v1443_v40 = vadd.f32 %v1442_v31, %v1441_v39  ;;  %p2005_p2 = scmp.lt.s32.totalorder %s2421_s11, %s2003_s6  ;;  %p2006_p3 = scmp.lt.s32.totalorder %s2004_s12, %s1998_s26 }
 0x141   : > { %p2001_p1 = pneg %p2000_p0 }
 0x142   : > { %v1425_v46 = vadd.f32 %v1424_v45, %v1423_v24  ;;  %v1444_v47 = vrot.slane %v1443_v40, 1  ;;  %p2007_p4 = por %p2006_p3, %p2005_p2 }
 0x144   : > { %1426 = vst [vmem:[%s227_s10] sm:$0x1] %v1425_v46  ;;  %v1445_v48 = vadd.f32 %v1444_v47, %v1443_v40  ;;  %p2008_p7 = pnand %p2007_p4, %p2001_p1 }
 0x146   : > { %2011 = shalt.err (!%p2008_p7)
}
 0x147   : > { %s2012_s8 = scalar_lea.hbm %s2419_s13, 16  ;;  %s2016_s22 = scalar_lea.hbm %s2499_s4, 32 }
 0x148   : > { %p2013_p8 = scmp.ne.s32.totalorder %s2419_s13, %s2012_s8  ;;  %p2017_p11 = scmp.lt.s32.totalorder %s2419_s13, %s2499_s4 }
 0x149   : > { %p2018_p12 = scmp.lt.s32.totalorder %s2016_s22, %s2012_s8 }
 0x14a   : > { %p2014_p9 = pnand %p2013_p8, %p2166_p5 }
 0x14b   : > { %p2019_p13 = por %p2018_p12, %p2017_p11 }
 0x14c   : > { %p2015_p10 = pneg %p2014_p9 }
 0x14e   : > { %p2020_p0 = pnand %p2019_p13, %p2015_p10 }
 0x150   : > { %2023 = shalt.err (!%p2020_p0)
}
 0x151   : > { %1883 = dma.vmem_to_hbm [thread:$0]  (%p2166_p5), %s2421_s11, 16, %s2419_s13, %s2430_s25   ;;  %1446 = vst [vmem:[%s233_s15] sm:$0x1] %v1445_v48 }
 0x152   : > { %s2024_s26 = scalar_lea.vmem %s2428_s30, 16  ;;  %s2095_s6 = smov [#allocation6]  }
 0x153   : > { %p2025_p1 = scmp.ne.s32.totalorder %s2428_s30, %s2024_s26  ;;  %s2028_s12 = sshll.u32 %s2095_s6, 4  ;;  %s2029_s12 = int_to_ptr.vmem [resolvable:$false] %s2028_s12 }
 0x154   : > { %s2030_s8 = scalar_lea.vmem %s2029_s12, 32  ;;  %p2031_p4 = scmp.lt.s32.totalorder %s2428_s30, %s2029_s12 }
 0x155   : > { %p2026_p2 = pnand %p2025_p1, %p2166_p5  ;;  %p2032_p7 = scmp.lt.s32.totalorder %s2030_s8, %s2024_s26 }
 0x157   : > { %p2027_p3 = pneg %p2026_p2  ;;  %p2033_p8 = por %p2032_p7, %p2031_p4 }
 0x159   : > { %p2034_p9 = pnand %p2033_p8, %p2027_p3 }
 0x15b   : > { %2037 = shalt.err (!%p2034_p9)
}
 0x15c   : > { %s2038_s17 = scalar_lea.hbm %s2426_s16, 16  ;;  %s2042_s13 = scalar_lea.hbm %s2500_s5, 32 }
 0x15d   : > { %p2039_p10 = scmp.ne.s32.totalorder %s2426_s16, %s2038_s17  ;;  %p2043_p13 = scmp.lt.s32.totalorder %s2426_s16, %s2500_s5 }
 0x15e   : > { %p2044_p0 = scmp.lt.s32.totalorder %s2042_s13, %s2038_s17 }
 0x15f   : > { %p2040_p11 = pnand %p2039_p10, %p2166_p5 }
 0x160   : > { %p2045_p1 = por %p2044_p0, %p2043_p13 }
 0x161   : > { %p2041_p12 = pneg %p2040_p11 }
 0x163   : > { %p2046_p2 = pnand %p2045_p1, %p2041_p12 }
 0x165   : > { %2049 = shalt.err (!%p2046_p2)
}
 0x166   : > { %1884 = dma.vmem_to_hbm [thread:$0]  (%p2166_p5), %s2428_s30, 16, %s2426_s16, %s2430_s25  }
 0x167 PF: > { %p1898_p3 = scmp.ge.s32.totalorder %s2088_s21, 2  ;;  %s1510_s22 = sand.u32 1, %s2076_s18  }
 0x168   : > { %s1511_s14 = scalar_lea.sflag [#allocation3], %s1510_s22 }
 0x169   : > { %p1889_p4 = pnand %p1898_p3, %p2170_p6 }
 0x16b   : > { %p1890_p7 = pneg %p1889_p4 }
 0x16d   : > { %2067 = dma.done.wait (%p1890_p7), %s1511_s14, 448  }
 0x16e   : > { %2069 = vsyncadd (%p1890_p7), %s1511_s14, 4294966848  ;;  %s1519_s7 = sand.u32 1, %s1610_s23  }
 0x16f   : > { %s1520_s28 = scalar_lea.sflag [#allocation5], %s1519_s7 }
 0x170   : > { %2071 = dma.done.wait (%p1890_p7), %s1520_s28, 32  }
 0x171   : > { %2073 = vsyncadd (%p1890_p7), %s1520_s28, 4294967264  ;;  %p19_p5 = scmp.ge.s32.totalorder %s2151_s24, 4   ;;  %s2503_s18 = smov %s2080_s19 }
 0x172   : > { %s2504_s19 = smov %s2084_s20  ;;  %s2505_s20 = smov %s2164_s27 }
 0x173   : > { %s2506_s21 = smov %s2151_s24  ;;  %21 = sbr.rel (!%p19_p5) target bundleno = 5 (0x5), region = 107 }
 0x178   :  { %1532 = vsyncpa [#allocation3], 1 }
 0x179   :  { %1534 = vsyncpa [#allocation3 + $0x1], 1 }
 0x17a   :  { %1535 = vsyncpa [#allocation5], 1 }
 0x17b   :  { %1537 = vsyncpa [#allocation5 + $0x1], 1 }

</bundles_post_ra>
